<compile_context>
chip_gen: v7x
topology: tpu7x:2x2x1
jax: 0.10.0
libtpu: 0.0.40
codegen_flags: <defaults>
</compile_context>

<pallas_src>
import functools

import jax
import jax.numpy as jnp
from jax import lax
from jax.experimental import pallas as pl
from jax.experimental.pallas import tpu as pltpu


# ----------------------------- fused Pallas kernel ---------------------------

def _fused_deconv_gn_drop_act_kernel(seed_ref, x_ref, w_ref, sel_ref, grp_ref,
                                     b_ref, gamma_ref, beta_ref, o_ref, *,
                                     eps, inv_group_count, drop_prob, act,
                                     training):
    x = x_ref[0]                         # (Cin, Ho*Wo) bf16, 2x2-upsampled input
    sel = sel_ref[...]                   # (1, Ho*Wo) int32, tap id = 2*(ho%2)+(wo%2)
    cout = o_ref.shape[1]
    lanes = x.shape[1]

    # ---- conv-transpose: 4 lane-dense matmuls + per-lane tap select ----------
    # (4x MXU overcompute vs. the exact contraction, but the op is HBM-bound
    # and K = Cin is tiny, so the extra flops are free.)
    y = jnp.zeros((cout, lanes), jnp.float32)
    for kk in range(4):                  # static unroll over the 2x2 taps
        p = jnp.dot(w_ref[kk], x, preferred_element_type=jnp.float32)
        y = y + jnp.where(sel == kk, p, 0.0)
    y = y + b_ref[...]                   # (Cout, 1) bias, resident

    # ---- GroupNorm: one-pass stats, group-combine via tiny indicator matmul --
    s1 = jnp.sum(y, axis=1, keepdims=True)         # (Cout, 1) per-channel sum
    s2 = jnp.sum(y * y, axis=1, keepdims=True)     # (Cout, 1) per-channel sumsq
    gs1 = jnp.dot(grp_ref[...], s1, precision=jax.lax.Precision.HIGHEST,
                  preferred_element_type=jnp.float32)
    gs2 = jnp.dot(grp_ref[...], s2, precision=jax.lax.Precision.HIGHEST,
                  preferred_element_type=jnp.float32)
    mean = gs1 * inv_group_count
    var = gs2 * inv_group_count - mean * mean      # biased, like torch GroupNorm
    rstd = lax.rsqrt(var + eps)
    scale = gamma_ref[...] * rstd                  # fold gamma into rstd
    shift = beta_ref[...] - mean * scale
    z = y * scale + shift

    # ---- Dropout (training only; eval mode is identity, matching nn.Dropout) -
    if training and drop_prob > 0.0:
        # Seed incorporates the batch grid index; if this kernel is ever tiled
        # over HW as well, fold that tile index into the seed too.
        pltpu.prng_seed(seed_ref[0] + pl.program_id(0))
        bits = pltpu.bitcast(pltpu.prng_random_bits(z.shape), jnp.uint32)
        thresh = jnp.uint32(int(drop_prob * 4294967296.0))
        z = jnp.where(bits >= thresh, z * (1.0 / (1.0 - drop_prob)), 0.0)

    # ---- SiLU ----------------------------------------------------------------
    if act:
        z = z * jax.nn.sigmoid(z)

    o_ref[0] = z


# ----------------------------------- wrapper ---------------------------------

def conv_transpose_gn_drop_act(x, w, b, gamma, beta, *, num_groups=8,
                               eps=1e-5, drop_prob=0.2, act=True,
                               training=False, seed=0):
    """x: (N, Cin, H, W); w: (Cin, Cout, 2, 2) [torch ConvTranspose2d layout]."""
    N, Cin, H, W = x.shape
    Cin_w, Cout, kH, kW = w.shape
    assert Cin == Cin_w and (kH, kW) == (2, 2)
    assert Cout % num_groups == 0
    Ho, Wo = kH * H, kW * W
    L = Ho * Wo
    Cg = Cout // num_groups

    # Nearest-neighbour 2x2 upsample of the (small) input -> kernel RHS with the
    # big spatial axis dense on lanes.  bf16 halves the dominant HBM read.
    x_up = jnp.repeat(jnp.repeat(x.astype(jnp.bfloat16), kH, axis=2), kW, axis=3)
    x_up = x_up.reshape(N, Cin, L)

    # Per-tap weights: (kH*kW, Cout, Cin), bf16.
    w_t = w.astype(jnp.bfloat16).transpose(2, 3, 1, 0).reshape(kH * kW, Cout, Cin)

    # Per-lane tap selector: kk = (ho % 2) * 2 + (wo % 2)  (tiny, resident).
    ho = jnp.arange(Ho, dtype=jnp.int32)[:, None]
    wo = jnp.arange(Wo, dtype=jnp.int32)[None, :]
    sel = ((ho % kH) * kW + (wo % kW)).reshape(1, L)

    # Same-group indicator matrix for the group-sum matmul (tiny, resident).
    ch = jnp.arange(Cout, dtype=jnp.int32)
    grp = (ch[:, None] // Cg == ch[None, :] // Cg).astype(jnp.float32)

    b2 = b.reshape(Cout, 1).astype(jnp.float32)
    gamma2 = gamma.reshape(Cout, 1).astype(jnp.float32)
    beta2 = beta.reshape(Cout, 1).astype(jnp.float32)
    seed_arr = jnp.array([seed], dtype=jnp.int32)

    kern = functools.partial(
        _fused_deconv_gn_drop_act_kernel, eps=eps,
        inv_group_count=1.0 / float(Cg * L),
        drop_prob=drop_prob, act=act, training=training)

    # TODO(synk): for very large samples (Cout*Ho*Wo*4B approaching v7x's 64 MiB
    # VMEM) the per-sample block should be HW-tiled with a two-pass GroupNorm
    # (sum/sumsq accumulation pass, then normalize/scatter pass).
    out = pl.pallas_call(
        kern,
        out_shape=jax.ShapeDtypeStruct((N, Cout, L), jnp.float32),
        grid=(N,),
        in_specs=[
            pl.BlockSpec(memory_space=pltpu.MemorySpace.SMEM),        # seed
            pl.BlockSpec((1, Cin, L), lambda n: (n, 0, 0)),           # x_up
            pl.BlockSpec((kH * kW, Cout, Cin), lambda n: (0, 0, 0)),  # w_t
            pl.BlockSpec((1, L), lambda n: (0, 0)),                   # sel
            pl.BlockSpec((Cout, Cout), lambda n: (0, 0)),             # grp
            pl.BlockSpec((Cout, 1), lambda n: (0, 0)),                # bias
            pl.BlockSpec((Cout, 1), lambda n: (0, 0)),                # gamma
            pl.BlockSpec((Cout, 1), lambda n: (0, 0)),                # beta
        ],
        out_specs=pl.BlockSpec((1, Cout, L), lambda n: (n, 0, 0)),
        compiler_params=pltpu.CompilerParams(
            dimension_semantics=("parallel",),
            vmem_limit_bytes=48 * 1024 * 1024),
    )(seed_arr, x_up, w_t, sel, grp, b2, gamma2, beta2)

    # (N, Cout, Ho*Wo) -> (N, Cout, Ho, Wo): minor-dim split, no data movement.
    return out.reshape(N, Cout, Ho, Wo)


# ------------------------- pure-JAX reference (eval mode) --------------------

def _reference(x, w, b, gamma, beta, num_groups=8, eps=1e-5):
    N, Cin, H, W = x.shape
    _, Cout, kH, kW = w.shape
    # Match the kernel's bf16 inputs (f32 accumulation) for apples-to-apples.
    xb = x.astype(jnp.bfloat16).astype(jnp.float32)
    wb = w.astype(jnp.bfloat16).astype(jnp.float32)
    y = jnp.einsum('ncij,cokl->nijklo', xb, wb,
                   precision=jax.lax.Precision.HIGHEST)   # (N,H,W,kH,kW,Cout)
    y = (y.transpose(0, 5, 1, 3, 2, 4).reshape(N, Cout, H * kH, W * kW)
         + b[None, :, None, None])
    yg = y.reshape(N, num_groups, -1)
    mean = yg.mean(axis=-1, keepdims=True)
    var = ((yg - mean) ** 2).mean(axis=-1, keepdims=True)
    yn = ((yg - mean) / jnp.sqrt(var + eps)).reshape(N, Cout, H * kH, W * kW)
    yn = yn * gamma[None, :, None, None] + beta[None, :, None, None]
    return yn * jax.nn.sigmoid(yn)         # dropout is identity in eval mode


# ------------------------------------ main ------------------------------------

if __name__ == "__main__":
    key = jax.random.PRNGKey(0)
    k1, k2, k3, k4, k5 = jax.random.split(key, 5)

    N, Cin, H, W = 2, 8, 16, 16
    Cout = 16                                   # divisible by 8 groups

    x = jax.random.normal(k1, (N, Cin, H, W), dtype=jnp.float32)
    w = 0.1 * jax.random.normal(k2, (Cin, Cout, 2, 2), dtype=jnp.float32)
    b = 0.1 * jax.random.normal(k3, (Cout,), dtype=jnp.float32)
    gamma = 1.0 + 0.1 * jax.random.normal(k4, (Cout,), dtype=jnp.float32)
    beta = 0.1 * jax.random.normal(k5, (Cout,), dtype=jnp.float32)

    # eval-mode forward (dropout == identity, matching module.eval()).
    # TODO(synk): training-mode dropout path exists in-kernel (pltpu PRNG,
    # uint32-threshold mask) but is not bit-exact vs torch's RNG stream.
    out = conv_transpose_gn_drop_act(x, w, b, gamma, beta, training=False)
    out = jax.block_until_ready(out)

    ref = _reference(x, w, b, gamma, beta)
    assert out.shape == (N, Cout, 2 * H, 2 * W)
    # bf16 conv inputs (in both kernel and reference) -> 1e-3 tolerance.
    assert jnp.allclose(out, ref, atol=1e-3, rtol=1e-3), (
        float(jnp.max(jnp.abs(out - ref))))

    print("KERNEL_OK")
</pallas_src>

<mosaic_0001>
module attributes {stable_mosaic.version = 11 : i64} {
  func.func @_fused_deconv_gn_drop_act_kernel(%arg0: i32, %arg1: memref<1xi32, #tpu.memory_space<smem>>, %arg2: memref<1x8x1024xbf16, #tpu.memory_space<vmem>>, %arg3: memref<4x16x8xbf16, #tpu.memory_space<vmem>>, %arg4: memref<1x1024xi32, #tpu.memory_space<vmem>>, %arg5: memref<16x16xf32, #tpu.memory_space<vmem>>, %arg6: memref<16x1xf32, #tpu.memory_space<vmem>>, %arg7: memref<16x1xf32, #tpu.memory_space<vmem>>, %arg8: memref<16x1xf32, #tpu.memory_space<vmem>>, %arg9: memref<1x16x1024xf32, #tpu.memory_space<vmem>>) attributes {dimension_semantics = [#tpu.dimension_semantics<parallel>], iteration_bounds = array<i64: 2>, scalar_prefetch = 0 : i64, scratch_operands = 0 : i64, tpu.core_type = #tpu.core_type<tc>, window_params = [{transform_indices = @transform_0, window_bounds = array<i64: 1>}, {transform_indices = @transform_1, window_bounds = array<i64: 1, 8, 1024>}, {pipeline_mode = #tpu.pipeline_mode<synchronous>, transform_indices = @transform_2, window_bounds = array<i64: 4, 16, 8>}, {pipeline_mode = #tpu.pipeline_mode<synchronous>, transform_indices = @transform_3, window_bounds = array<i64: 1, 1024>}, {pipeline_mode = #tpu.pipeline_mode<synchronous>, transform_indices = @transform_4, window_bounds = array<i64: 16, 16>}, {pipeline_mode = #tpu.pipeline_mode<synchronous>, transform_indices = @transform_5, window_bounds = array<i64: 16, 1>}, {pipeline_mode = #tpu.pipeline_mode<synchronous>, transform_indices = @transform_6, window_bounds = array<i64: 16, 1>}, {pipeline_mode = #tpu.pipeline_mode<synchronous>, transform_indices = @transform_7, window_bounds = array<i64: 16, 1>}, {transform_indices = @transform_8, window_bounds = array<i64: 1, 16, 1024>}]} {
    %c0 = arith.constant 0 : index
    %c0_0 = arith.constant 0 : index
    %c0_1 = arith.constant 0 : index
    %0 = vector.load %arg2[%c0, %c0_0, %c0_1] : memref<1x8x1024xbf16, #tpu.memory_space<vmem>>, vector<1x8x1024xbf16>
    %1 = vector.shape_cast %0 : vector<1x8x1024xbf16> to vector<8x1024xbf16>
    %c0_2 = arith.constant 0 : index
    %c0_3 = arith.constant 0 : index
    %2 = vector.load %arg4[%c0_2, %c0_3] : memref<1x1024xi32, #tpu.memory_space<vmem>>, vector<1x1024xi32>
    %cst = arith.constant 0.000000e+00 : f32
    %3 = vector.broadcast %cst : f32 to vector<16x1024xf32>
    %c0_4 = arith.constant 0 : index
    %c0_5 = arith.constant 0 : index
    %c0_6 = arith.constant 0 : index
    %4 = vector.load %arg3[%c0_4, %c0_5, %c0_6] : memref<4x16x8xbf16, #tpu.memory_space<vmem>>, vector<1x16x8xbf16>
    %5 = vector.shape_cast %4 : vector<1x16x8xbf16> to vector<16x8xbf16>
    %cst_7 = arith.constant dense<0.000000e+00> : vector<16x1024xf32>
    %6 = tpu.matmul %5, %1, %cst_7 {dimension_numbers = #tpu.dot_dimension_numbers<[1], [0], [0], [1], [0, 0, 1, 1], [], []>} : vector<16x8xbf16>, vector<8x1024xbf16>, vector<16x1024xf32> -> vector<16x1024xf32>
    %c0_i32 = arith.constant 0 : i32
    %7 = vector.broadcast %c0_i32 : i32 to vector<1x1024xi32>
    %8 = arith.cmpi eq, %2, %7 : vector<1x1024xi32>
    %cst_8 = arith.constant 0.000000e+00 : f32
    %9 = vector.shape_cast %8 : vector<1x1024xi1> to vector<1x1024xi1>
    %10 = vector.broadcast %9 : vector<1x1024xi1> to vector<16x1024xi1>
    %11 = vector.broadcast %cst_8 : f32 to vector<16x1024xf32>
    %12 = arith.select %10, %6, %11 : vector<16x1024xi1>, vector<16x1024xf32>
    %13 = arith.addf %3, %12 : vector<16x1024xf32>
    %c1 = arith.constant 1 : index
    %c0_9 = arith.constant 0 : index
    %c0_10 = arith.constant 0 : index
    %14 = vector.load %arg3[%c1, %c0_9, %c0_10] : memref<4x16x8xbf16, #tpu.memory_space<vmem>>, vector<1x16x8xbf16>
    %15 = vector.shape_cast %14 : vector<1x16x8xbf16> to vector<16x8xbf16>
    %cst_11 = arith.constant dense<0.000000e+00> : vector<16x1024xf32>
    %16 = tpu.matmul %15, %1, %cst_11 {dimension_numbers = #tpu.dot_dimension_numbers<[1], [0], [0], [1], [0, 0, 1, 1], [], []>} : vector<16x8xbf16>, vector<8x1024xbf16>, vector<16x1024xf32> -> vector<16x1024xf32>
    %c1_i32 = arith.constant 1 : i32
    %17 = vector.broadcast %c1_i32 : i32 to vector<1x1024xi32>
    %18 = arith.cmpi eq, %2, %17 : vector<1x1024xi32>
    %cst_12 = arith.constant 0.000000e+00 : f32
    %19 = vector.shape_cast %18 : vector<1x1024xi1> to vector<1x1024xi1>
    %20 = vector.broadcast %19 : vector<1x1024xi1> to vector<16x1024xi1>
    %21 = vector.broadcast %cst_12 : f32 to vector<16x1024xf32>
    %22 = arith.select %20, %16, %21 : vector<16x1024xi1>, vector<16x1024xf32>
    %23 = arith.addf %13, %22 : vector<16x1024xf32>
    %c2 = arith.constant 2 : index
    %c0_13 = arith.constant 0 : index
    %c0_14 = arith.constant 0 : index
    %24 = vector.load %arg3[%c2, %c0_13, %c0_14] : memref<4x16x8xbf16, #tpu.memory_space<vmem>>, vector<1x16x8xbf16>
    %25 = vector.shape_cast %24 : vector<1x16x8xbf16> to vector<16x8xbf16>
    %cst_15 = arith.constant dense<0.000000e+00> : vector<16x1024xf32>
    %26 = tpu.matmul %25, %1, %cst_15 {dimension_numbers = #tpu.dot_dimension_numbers<[1], [0], [0], [1], [0, 0, 1, 1], [], []>} : vector<16x8xbf16>, vector<8x1024xbf16>, vector<16x1024xf32> -> vector<16x1024xf32>
    %c2_i32 = arith.constant 2 : i32
    %27 = vector.broadcast %c2_i32 : i32 to vector<1x1024xi32>
    %28 = arith.cmpi eq, %2, %27 : vector<1x1024xi32>
    %cst_16 = arith.constant 0.000000e+00 : f32
    %29 = vector.shape_cast %28 : vector<1x1024xi1> to vector<1x1024xi1>
    %30 = vector.broadcast %29 : vector<1x1024xi1> to vector<16x1024xi1>
    %31 = vector.broadcast %cst_16 : f32 to vector<16x1024xf32>
    %32 = arith.select %30, %26, %31 : vector<16x1024xi1>, vector<16x1024xf32>
    %33 = arith.addf %23, %32 : vector<16x1024xf32>
    %c3 = arith.constant 3 : index
    %c0_17 = arith.constant 0 : index
    %c0_18 = arith.constant 0 : index
    %34 = vector.load %arg3[%c3, %c0_17, %c0_18] : memref<4x16x8xbf16, #tpu.memory_space<vmem>>, vector<1x16x8xbf16>
    %35 = vector.shape_cast %34 : vector<1x16x8xbf16> to vector<16x8xbf16>
    %cst_19 = arith.constant dense<0.000000e+00> : vector<16x1024xf32>
    %36 = tpu.matmul %35, %1, %cst_19 {dimension_numbers = #tpu.dot_dimension_numbers<[1], [0], [0], [1], [0, 0, 1, 1], [], []>} : vector<16x8xbf16>, vector<8x1024xbf16>, vector<16x1024xf32> -> vector<16x1024xf32>
    %c3_i32 = arith.constant 3 : i32
    %37 = vector.broadcast %c3_i32 : i32 to vector<1x1024xi32>
    %38 = arith.cmpi eq, %2, %37 : vector<1x1024xi32>
    %cst_20 = arith.constant 0.000000e+00 : f32
    %39 = vector.shape_cast %38 : vector<1x1024xi1> to vector<1x1024xi1>
    %40 = vector.broadcast %39 : vector<1x1024xi1> to vector<16x1024xi1>
    %41 = vector.broadcast %cst_20 : f32 to vector<16x1024xf32>
    %42 = arith.select %40, %36, %41 : vector<16x1024xi1>, vector<16x1024xf32>
    %43 = arith.addf %33, %42 : vector<16x1024xf32>
    %c0_21 = arith.constant 0 : index
    %c0_22 = arith.constant 0 : index
    %44 = vector.load %arg6[%c0_21, %c0_22] : memref<16x1xf32, #tpu.memory_space<vmem>>, vector<16x1xf32>
    %45 = vector.broadcast %44 : vector<16x1xf32> to vector<16x1024xf32>
    %46 = arith.addf %43, %45 : vector<16x1024xf32>
    %cst_23 = arith.constant dense<0.000000e+00> : vector<16xf32>
    %47 = vector.multi_reduction <add>, %46, %cst_23 [1] : vector<16x1024xf32> to vector<16xf32>
    %48 = vector.shape_cast %47 : vector<16xf32> to vector<16x1xf32>
    %49 = arith.mulf %46, %46 : vector<16x1024xf32>
    %cst_24 = arith.constant dense<0.000000e+00> : vector<16xf32>
    %50 = vector.multi_reduction <add>, %49, %cst_24 [1] : vector<16x1024xf32> to vector<16xf32>
    %51 = vector.shape_cast %50 : vector<16xf32> to vector<16x1xf32>
    %c0_25 = arith.constant 0 : index
    %c0_26 = arith.constant 0 : index
    %52 = vector.load %arg5[%c0_25, %c0_26] : memref<16x16xf32, #tpu.memory_space<vmem>>, vector<16x16xf32>
    %cst_27 = arith.constant dense<0.000000e+00> : vector<16x1xf32>
    %53 = tpu.matmul %52, %48, %cst_27 {dimension_numbers = #tpu.dot_dimension_numbers<[1], [0], [0], [1], [0, 0, 1, 1], [], []>, precision = #tpu.contract_precision<fp32>} : vector<16x16xf32>, vector<16x1xf32>, vector<16x1xf32> -> vector<16x1xf32>
    %c0_28 = arith.constant 0 : index
    %c0_29 = arith.constant 0 : index
    %54 = vector.load %arg5[%c0_28, %c0_29] : memref<16x16xf32, #tpu.memory_space<vmem>>, vector<16x16xf32>
    %cst_30 = arith.constant dense<0.000000e+00> : vector<16x1xf32>
    %55 = tpu.matmul %54, %51, %cst_30 {dimension_numbers = #tpu.dot_dimension_numbers<[1], [0], [0], [1], [0, 0, 1, 1], [], []>, precision = #tpu.contract_precision<fp32>} : vector<16x16xf32>, vector<16x1xf32>, vector<16x1xf32> -> vector<16x1xf32>
    %cst_31 = arith.constant 4.8828125E-4 : f32
    %56 = vector.broadcast %cst_31 : f32 to vector<16x1xf32>
    %57 = arith.mulf %53, %56 : vector<16x1xf32>
    %cst_32 = arith.constant 4.8828125E-4 : f32
    %58 = vector.broadcast %cst_32 : f32 to vector<16x1xf32>
    %59 = arith.mulf %55, %58 : vector<16x1xf32>
    %60 = arith.mulf %57, %57 : vector<16x1xf32>
    %61 = arith.subf %59, %60 : vector<16x1xf32>
    %cst_33 = arith.constant 9.99999974E-6 : f32
    %62 = vector.broadcast %cst_33 : f32 to vector<16x1xf32>
    %63 = arith.addf %61, %62 : vector<16x1xf32>
    %64 = math.rsqrt %63 : vector<16x1xf32>
    %c0_34 = arith.constant 0 : index
    %c0_35 = arith.constant 0 : index
    %65 = vector.load %arg7[%c0_34, %c0_35] : memref<16x1xf32, #tpu.memory_space<vmem>>, vector<16x1xf32>
    %66 = arith.mulf %65, %64 : vector<16x1xf32>
    %c0_36 = arith.constant 0 : index
    %c0_37 = arith.constant 0 : index
    %67 = vector.load %arg8[%c0_36, %c0_37] : memref<16x1xf32, #tpu.memory_space<vmem>>, vector<16x1xf32>
    %68 = arith.mulf %57, %66 : vector<16x1xf32>
    %69 = arith.subf %67, %68 : vector<16x1xf32>
    %70 = vector.broadcast %66 : vector<16x1xf32> to vector<16x1024xf32>
    %71 = arith.mulf %46, %70 : vector<16x1024xf32>
    %72 = vector.broadcast %69 : vector<16x1xf32> to vector<16x1024xf32>
    %73 = arith.addf %71, %72 : vector<16x1024xf32>
    %74 = arith.negf %73 : vector<16x1024xf32>
    %75 = math.exp %74 : vector<16x1024xf32>
    %cst_38 = arith.constant 1.000000e+00 : f32
    %76 = vector.broadcast %cst_38 : f32 to vector<16x1024xf32>
    %77 = arith.addf %76, %75 : vector<16x1024xf32>
    %78 = arith.divf %76, %77 : vector<16x1024xf32>
    %79 = arith.mulf %73, %78 : vector<16x1024xf32>
    %c0_39 = arith.constant 0 : index
    %c0_40 = arith.constant 0 : index
    %c0_41 = arith.constant 0 : index
    %80 = vector.load %arg9[%c0_39, %c0_40, %c0_41] : memref<1x16x1024xf32, #tpu.memory_space<vmem>>, vector<1x16x1024xf32>
    %81 = vector.shape_cast %80 : vector<1x16x1024xf32> to vector<16x1024xf32>
    %82 = vector.shape_cast %79 : vector<16x1024xf32> to vector<1x16x1024xf32>
    tpu.vector_store %arg9[%c0_39, %c0_40, %c0_41], %82 {strides = array<i32>} : memref<1x16x1024xf32, #tpu.memory_space<vmem>>, vector<1x16x1024xf32>,
    return
  }
  func.func @transform_0(%arg0: i32) -> i32 {
    %c0_i32 = arith.constant 0 : i32
    %c0_i32_0 = arith.constant 0 : i32
    return %c0_i32 : i32
  }
  func.func @transform_1(%arg0: i32) -> (i32, i32, i32) {
    %c0_i32 = arith.constant 0 : i32
    %c0_i32_0 = arith.constant 0 : i32
    %c0_i32_1 = arith.constant 0 : i32
    return %arg0, %c0_i32, %c0_i32_0 : i32, i32, i32
  }
  func.func @transform_2(%arg0: i32) -> (i32, i32, i32) {
    %c0_i32 = arith.constant 0 : i32
    %c0_i32_0 = arith.constant 0 : i32
    %c0_i32_1 = arith.constant 0 : i32
    %c0_i32_2 = arith.constant 0 : i32
    return %c0_i32, %c0_i32_0, %c0_i32_1 : i32, i32, i32
  }
  func.func @transform_3(%arg0: i32) -> (i32, i32) {
    %c0_i32 = arith.constant 0 : i32
    %c0_i32_0 = arith.constant 0 : i32
    %c0_i32_1 = arith.constant 0 : i32
    return %c0_i32, %c0_i32_0 : i32, i32
  }
  func.func @transform_4(%arg0: i32) -> (i32, i32) {
    %c0_i32 = arith.constant 0 : i32
    %c0_i32_0 = arith.constant 0 : i32
    %c0_i32_1 = arith.constant 0 : i32
    return %c0_i32, %c0_i32_0 : i32, i32
  }
  func.func @transform_5(%arg0: i32) -> (i32, i32) {
    %c0_i32 = arith.constant 0 : i32
    %c0_i32_0 = arith.constant 0 : i32
    %c0_i32_1 = arith.constant 0 : i32
    return %c0_i32, %c0_i32_0 : i32, i32
  }
  func.func @transform_6(%arg0: i32) -> (i32, i32) {
    %c0_i32 = arith.constant 0 : i32
    %c0_i32_0 = arith.constant 0 : i32
    %c0_i32_1 = arith.constant 0 : i32
    return %c0_i32, %c0_i32_0 : i32, i32
  }
  func.func @transform_7(%arg0: i32) -> (i32, i32) {
    %c0_i32 = arith.constant 0 : i32
    %c0_i32_0 = arith.constant 0 : i32
    %c0_i32_1 = arith.constant 0 : i32
    return %c0_i32, %c0_i32_0 : i32, i32
  }
  func.func @transform_8(%arg0: i32) -> (i32, i32, i32) {
    %c0_i32 = arith.constant 0 : i32
    %c0_i32_0 = arith.constant 0 : i32
    %c0_i32_1 = arith.constant 0 : i32
    return %arg0, %c0_i32, %c0_i32_0 : i32, i32, i32
  }
}

</mosaic_0001>

<bundles_post_ra>
// kernel: tpu_custom_call.1
= control target key start
LH: loop header
LB: loop body
LE: loop exit
PB: predicated region body
PF: predicated region fallthrough
CT: control target
= control target key end

     0   :  { %14 = vsyncpa [#allocation4], 0  ;;  %s4223_s0 = inlined_call_operand.<no memory space> [shape: s32[1], index: 0, kind: input, shape index: {}]   ;;  %s4224_s1 = inlined_call_operand.vmem [shape: bf16[2,8,1024], index: 1, kind: input, shape index: {}]   ;;  %s4225_s2 = inlined_call_operand.vmem [shape: bf16[4,16,8], index: 2, kind: input, shape index: {}]   ;;  %s4226_s3 = inlined_call_operand.vmem [shape: s32[1,1024], index: 3, kind: input, shape index: {}]   ;;  %s4227_s4 = inlined_call_operand.vmem [shape: f32[16,16], index: 4, kind: input, shape index: {}]   ;;  %s4228_s5 = inlined_call_operand.vmem [shape: f32[16,1], index: 5, kind: input, shape index: {}]   ;;  %s4229_s6 = inlined_call_operand.vmem [shape: f32[16,1], index: 6, kind: input, shape index: {}]   ;;  %s4230_s7 = inlined_call_operand.vmem [shape: f32[16,1], index: 7, kind: input, shape index: {}]   ;;  %s4231_s8 = inlined_call_operand.hbm [shape: f32[2,16,1024], index: 8, kind: output, shape index: {}]  }
   0x1   :  { %16 = vsyncpa [#allocation4 + $0x1], 0  ;;  %s3272_s26 = smov 0   ;;  %s3274_s27 = smov 0  }
   0x2   :  { %s3276_s28 = smov 0   ;;  %s3278_s29 = smov 0  }
   0x3 LB: > { %s3293_s30 = sadd.s32 4294967295, %s3221_s29   ;;  %s2755_s9 = sadd.s32 4294967294, %s3221_s29   ;;  %s3221_s29 = sphi %s3278_s29, %s4301_s29   ;;  %s3217_s28 = sphi %s3276_s28, %s4300_s28   ;;  %s3213_s27 = sphi %s3274_s27, %s4299_s27   ;;  %s3209_s26 = sphi %s3272_s26, %s4298_s26  }
   0x4   : > { %s3297_s10 = sadd.s32 1, %s3221_s29   ;;  %s202_s11 = sadd.s32 1, %s3217_s28 }
   0x5   : > { %s199_s12 = ssub.s32 %s3221_s29, %s3297_s10  ;;  %p212_p0 = scmp.ne.s32.totalorder %s3217_s28, %s3213_s27 }
   0x6   : > { %p200_p1 = scmp.eq.s32.totalorder %s199_s12, 0  ;;  %p213_p2 = scmp.eq.s32.totalorder %s3293_s30, 1 }
   0x7   : > { %p218_p3 = scmp.ne.s32.totalorder %s3213_s27, %s3209_s26  ;;  %p219_p4 = scmp.eq.s32.totalorder %s2755_s9, 1 }
   0x8   : > { %s3308_s13 = scalar_select %p200_p1, %s3217_s28, %s202_s11  }
   0x9   : > { %p3310_p5 = por %p213_p2, %p212_p0  ;;  %p3314_p6 = por %p219_p4, %p218_p3 }
   0xa   : > { %p2758_p7 = scmp.ge.s32.totalorder %s3221_s29, 1  ;;  %p266_p8 = scmp.lt.s32.totalorder %s3221_s29, 3 }
   0xc   : > { %p267_p9 = pnand %p2758_p7, %p266_p8 }
   0xd   : > { %p300_p10 = scmp.lt.s32.totalorder (!%p267_p9), %s3293_s30, 1  ;;  %v3223_v0 = vmov (!%p267_p9), 0   ;;  %v1384_v1 = vld [vmem:[%s4228_s5] sm:$0xff] (!%p267_p9)  ;;  %vm342_vm0 = vcmask (!%p267_p9), 1043456   ;;  %v1385_v17 = vld [vmem:[%s4228_s5 + $0x8] sm:$0xff] (!%p267_p9)  ;;  %vm338_vm1 = vcmask (!%p267_p9), 64512   ;;  %v541_v23 = vlaneseq (!%p267_p9) }
   0xe   : > { %270 = sbr.rel (%p267_p9) target bundleno = 949 (0x3b5), region = 52  ;;  %399 = vmatprep.mubr.bf16.mxu0 (!%p267_p9), %v3223_v0  ;;  %442 = vmatprep.mubr.bf16.mxu1 (!%p267_p9), %v3223_v0  ;;  %v3083_v16 = vld [vmem:[%s4225_s2] sm:$0xff] (!%p267_p9)   ;;  %v3088_v20 = vld [vmem:[%s4225_s2 + $0x8] sm:$0xff] (!%p267_p9)   ;;  %v3089_v21 = vld [vmem:[%s4225_s2 + $0x10] sm:$0xff] (!%p267_p9)   ;;  %s297_s19 = sand.u32 (!%p267_p9), 1, %s3213_s27  }
   0xf   : > { %3077 = vset.pattern.permute.xlu0 (!%p267_p9), %v3223_v0  ;;  %3078 = vset.pattern.permute.xlu1 (!%p267_p9), %v3223_v0  ;;  %v3090_v22 = vld [vmem:[%s4225_s2 + $0x18] sm:$0xff] (!%p267_p9)   ;;  %v3424_v24 = vld [vmem:[%s4226_s3] sm:$0xff] (!%p267_p9)  ;;  %v542_v25 = vshrl.u32 (!%p267_p9), %v541_v23, 7  ;;  %s2759_s20 = sshll.u32 (!%p267_p9), %s297_s19, 7  ;;  %s3224_s11 = smov (!%p267_p9), [#allocation3]  }
  0x10   : > { %1388 = vperm.xlu0 (!%p267_p9), %3077, %v1384_v1   ;;  %vm539_vm2 = vcmp.eq.s32.totalorder (!%p267_p9), %v3424_v24, 0  ;;  %vm796_vm3 = vcmp.eq.s32.totalorder (!%p267_p9), %v3424_v24, 1  ;;  %vm1053_vm10 = vcmp.eq.s32.totalorder (!%p267_p9), %v3424_v24, 2  ;;  %s4140_s21 = scalar_lea.vmem (!%p267_p9), [#allocation3], %s2759_s20  ;;  %s3163_s12 = sshll.u32 (!%p267_p9), %s3224_s11, 4  ;;  %s3164_s12 = int_to_ptr.vmem [resolvable:$false] %s3163_s12 }
  0x11   : > { %v3435_v30 = vsub.s32 (!%p267_p9), 0, %v542_v25  ;;  %v540_v33 = vsel (!%p267_p9), %vm539_vm2, 1, %v3223_v0  ;;  %v3442_v34 = vsub.s32 (!%p267_p9), 1, %v542_v25  ;;  %v3444_v35 = vsub.s32 (!%p267_p9), 2, %v542_v25  ;;  %s2693_s23 = sshll.u32 (!%p267_p9), %s4140_s21, 4  ;;  %s4174_s23 = int_to_ptr.vmem [resolvable:$true] %s2693_s23 }
  0x12   : > { %v3451_v38 = vsub.s32 (!%p267_p9), 3, %v542_v25  ;;  %v3453_v39 = vsub.s32 (!%p267_p9), 4, %v542_v25  ;;  %v3455_v40 = vsub.s32 (!%p267_p9), 5, %v542_v25  ;;  %v3457_v41 = vsub.s32 (!%p267_p9), 6, %v542_v25  ;;  %s3159_s9 = scalar_lea.vmem (!%p267_p9), %s4174_s23, 2048  ;;  %p3166_p0 = scmp.lt.s32.totalorder (!%p267_p9), %s4174_s23, %s3164_s12 }
  0x13   : > { %v3459_v42 = vsub.s32 (!%p267_p9), 7, %v542_v25  ;;  %v3462_v43 = vsel (!%p267_p9), %vm796_vm3, 1, %v3223_v0  ;;  %v544_v44 = vrot.slane (!%p267_p9), %v540_v33, %v3435_v30  ;;  %v548_v45 = vrot.slane (!%p267_p9), %v540_v33, %v3442_v34  ;;  %p3160_p11 = scmp.ne.s32.totalorder (!%p267_p9), %s4174_s23, %s3159_s9 }
  0x14   : > { %1393 = vperm.xlu0 (!%p267_p9), %3077, %v1385_v17   ;;  %v552_v46 = vrot.slane (!%p267_p9), %v540_v33, %v3444_v35  ;;  %v556_v47 = vrot.slane (!%p267_p9), %v540_v33, %v3451_v38  ;;  %v560_v49 = vrot.slane (!%p267_p9), %v540_v33, %v3453_v39  ;;  %v564_v50 = vrot.slane (!%p267_p9), %v540_v33, %v3455_v40 }
  0x15   : > { %s301_s16 = scalar_select %p300_p10, %s3293_s30, 1  ;;  %v568_v52 = vrot.slane %v540_v33, %v3457_v41  ;;  %v572_v55 = vrot.slane %v540_v33, %v3459_v42  ;;  %v801_v56 = vrot.slane %v3462_v43, %v3435_v30  ;;  %v809_v57 = vrot.slane %v3462_v43, %v3444_v35 }
  0x16   : > { %v805_v58 = vrot.slane %v3462_v43, %v3442_v34  ;;  %v813_v61 = vrot.slane %v3462_v43, %v3451_v38  ;;  %vm3492_vm4 = vcmp.eq.s32.totalorder %v544_v44, 1  ;;  %vm3496_vm5 = vcmp.eq.s32.totalorder %v548_v45, 1  ;;  %p3161_p12 = pnand %p3160_p11, %p3310_p5 }
  0x17   : > { %s2833_s17 = sshll.u32 %s301_s16, 5  ;;  %vm3500_vm6 = vcmp.eq.s32.totalorder %v552_v46, 1  ;;  %vm3508_vm7 = vcmp.eq.s32.totalorder %v556_v47, 1  ;;  %vm3512_vm8 = vcmp.eq.s32.totalorder %v560_v49, 1  ;;  %vm3516_vm9 = vcmp.eq.s32.totalorder %v568_v52, 1  ;;  %s3165_s16 = scalar_lea.vmem %s3164_s12, 4096 }
  0x18   : > { %s304_s22 = scalar_lea.vmem %s4224_s1, %s2833_s17  ;;  %vm3521_vm11 = vcmp.eq.s32.totalorder %v564_v50, 1  ;;  %vm3525_vm12 = vcmp.eq.s32.totalorder %v572_v55, 1  ;;  %vm3529_vm13 = vcmp.eq.s32.totalorder %v801_v56, 1  ;;  %vm3533_vm14 = vcmp.eq.s32.totalorder %v809_v57, 1  ;;  %p3162_p13 = pneg %p3161_p12 }
  0x19   : > { %v306_v2 = vld [vmem:[%s304_s22] sm:$0xff]  ;;  %v307_v3 = vld [vmem:[%s304_s22 + $0x8] sm:$0xff]  ;;  %v308_v4 = vld [vmem:[%s304_s22 + $0x10] sm:$0xff]  ;;  %vm3537_vm15 = vcmp.eq.s32.totalorder %v805_v58, 1  ;;  %p3167_p1 = scmp.lt.s32.totalorder %s3165_s16, %s3159_s9 }
  0x1a   : > { %v3332_v5 = vcombine.high %v306_v2, %v306_v2  ;;  %v3334_v6 = vcombine.high %v307_v3, %v307_v3  ;;  %v2763_v7 = vcombine.low %v306_v2, %v306_v2  ;;  %v2765_v8 = vcombine.low %v307_v3, %v307_v3  ;;  %v309_v9 = vld [vmem:[%s304_s22 + $0x18] sm:$0xff]  ;;  %s2834_s22 = sshll.u32 %s3293_s30, 11  ;;  %s4182_s30 = scalar_lea.sflag [#allocation4], %s297_s19 }
  0x1b   : > { %v3336_v10 = vcombine.high %v308_v4, %v308_v4  ;;  %v3338_v11 = vcombine.high %v309_v9, %v309_v9  ;;  %v2767_v12 = vcombine.low %v308_v4, %v308_v4  ;;  %v2769_v13 = vcombine.low %v309_v9, %v309_v9  ;;  %s4172_s25 = scalar_lea.hbm %s4231_s8, %s2834_s22  ;;  %p3168_p2 = por %p3167_p1, %p3166_p0 }
  0x1c   : > { %2771 = vmatprep.subr.msk.bf16.mxu0 %vm342_vm0, %v3332_v5  ;;  %2773 = vmatprep.subr.msk.bf16.mxu1 %vm342_vm0, %v3334_v6  ;;  %v344_v14 = vsel %vm342_vm0, %v2763_v7, 0  ;;  %v350_v15 = vsel %vm342_vm0, %v2765_v8, 0 }
  0x1d   : > { %368 = vmatpush1.bf16.msra.mxu0 %v344_v14  ;;  %411 = vmatpush1.bf16.msra.mxu1 %v350_v15  ;;  %v356_v18 = vsel %vm342_vm0, %v2767_v12, 0  ;;  %v362_v19 = vsel %vm342_vm0, %v2769_v13, 0  ;;  %v817_v13 = vrot.slane %v3462_v43, %v3453_v39  ;;  %p3169_p3 = pnand %p3168_p2, %p3162_p13 }
  0x1e   : > { %2775 = vmatprep.subr.msk.bf16.mxu0 %vm342_vm0, %v3336_v10  ;;  %2777 = vmatprep.subr.msk.bf16.mxu1 %vm342_vm0, %v3338_v11 }
  0x20   : > { %2772 = vmatmul.mubr.msk.bf16.vlgmr.msra.gmra.mrb[0].mxu0 %vm338_vm1, %v3083_v16  ;;  %2774 = vmatmul.mubr.msk.bf16.vlgmr.msra.gmra.mrb[0].mxu1 %vm338_vm1, %v3083_v16 }
  0x21   : > { %454 = vmatpush1.bf16.msra.mxu0 %v356_v18  ;;  %497 = vmatpush1.bf16.msra.mxu1 %v362_v19 }
  0x22   : > { %485 = vmatprep.mubr.bf16.mxu0 %v3223_v0  ;;  %528 = vmatprep.mubr.bf16.mxu1 %v3223_v0 }
  0x23   : > { %2782 = vmatprep.subr.msk.bf16.mxu0 %vm342_vm0, %v3332_v5  ;;  %2784 = vmatprep.subr.msk.bf16.mxu1 %vm342_vm0, %v3334_v6 }
  0x28   : > { %2776 = vmatmul.mubr.msk.bf16.vlgmr.msra.gmra.mrb[4].mxu0 %vm338_vm1, %v3083_v16  ;;  %2778 = vmatmul.mubr.msk.bf16.vlgmr.msra.gmra.mrb[4].mxu1 %vm338_vm1, %v3083_v16 }
  0x29   : > { %625 = vmatpush1.bf16.msra.mxu0 %v344_v14  ;;  %668 = vmatpush1.bf16.msra.mxu1 %v350_v15 }
  0x2a   : > { %656 = vmatprep.mubr.bf16.mxu0 %v3223_v0  ;;  %699 = vmatprep.mubr.bf16.mxu1 %v3223_v0 }
  0x2b   : > { %2786 = vmatprep.subr.msk.bf16.mxu0 %vm342_vm0, %v3336_v10  ;;  %2788 = vmatprep.subr.msk.bf16.mxu1 %vm342_vm0, %v3338_v11 }
  0x30   : > { %2783 = vmatmul.mubr.msk.bf16.vlgmr.msra.gmra.mrb[8].mxu0 %vm338_vm1, %v3088_v20  ;;  %2785 = vmatmul.mubr.msk.bf16.vlgmr.msra.gmra.mrb[8].mxu1 %vm338_vm1, %v3088_v20 }
  0x31   : > { %711 = vmatpush1.bf16.msra.mxu0 %v356_v18  ;;  %754 = vmatpush1.bf16.msra.mxu1 %v362_v19 }
  0x32   : > { %742 = vmatprep.mubr.bf16.mxu0 %v3223_v0  ;;  %785 = vmatprep.mubr.bf16.mxu1 %v3223_v0 }
  0x33   : > { %2793 = vmatprep.subr.msk.bf16.mxu0 %vm342_vm0, %v3332_v5  ;;  %2795 = vmatprep.subr.msk.bf16.mxu1 %vm342_vm0, %v3334_v6 }
  0x38   : > { %2787 = vmatmul.mubr.msk.bf16.vlgmr.msra.gmra.mrb[12].mxu0 %vm338_vm1, %v3088_v20  ;;  %2789 = vmatmul.mubr.msk.bf16.vlgmr.msra.gmra.mrb[12].mxu1 %vm338_vm1, %v3088_v20 }
  0x39   : > { %882 = vmatpush1.bf16.msra.mxu0 %v344_v14  ;;  %925 = vmatpush1.bf16.msra.mxu1 %v350_v15 }
  0x3a   : > { %913 = vmatprep.mubr.bf16.mxu0 %v3223_v0  ;;  %956 = vmatprep.mubr.bf16.mxu1 %v3223_v0 }
  0x3b   : > { %2797 = vmatprep.subr.msk.bf16.mxu0 %vm342_vm0, %v3336_v10  ;;  %2799 = vmatprep.subr.msk.bf16.mxu1 %vm342_vm0, %v3338_v11 }
  0x40   : > { %2794 = vmatmul.mubr.msk.bf16.vlgmr.msra.gmra.mrb[16].mxu0 %vm338_vm1, %v3089_v21  ;;  %2796 = vmatmul.mubr.msk.bf16.vlgmr.msra.gmra.mrb[16].mxu1 %vm338_vm1, %v3089_v21 }
  0x41   : > { %968 = vmatpush1.bf16.msra.mxu0 %v356_v18  ;;  %1011 = vmatpush1.bf16.msra.mxu1 %v362_v19 }
  0x42   : > { %999 = vmatprep.mubr.bf16.mxu0 %v3223_v0  ;;  %1042 = vmatprep.mubr.bf16.mxu1 %v3223_v0 }
  0x43   : > { %2804 = vmatprep.subr.msk.bf16.mxu0 %vm342_vm0, %v3332_v5  ;;  %2806 = vmatprep.subr.msk.bf16.mxu1 %vm342_vm0, %v3334_v6 }
  0x48   : > { %2798 = vmatmul.mubr.msk.bf16.vlgmr.msra.gmra.mrb[20].mxu0 %vm338_vm1, %v3089_v21  ;;  %2800 = vmatmul.mubr.msk.bf16.vlgmr.msra.gmra.mrb[20].mxu1 %vm338_vm1, %v3089_v21 }
  0x49   : > { %1139 = vmatpush1.bf16.msra.mxu0 %v344_v14  ;;  %1182 = vmatpush1.bf16.msra.mxu1 %v350_v15  ;;  %v825_v14 = vrot.slane %v3462_v43, %v3457_v41  ;;  %v821_v15 = vrot.slane %v3462_v43, %v3455_v40 }
  0x4a   : > { %1170 = vmatprep.mubr.bf16.mxu0 %v3223_v0  ;;  %1213 = vmatprep.mubr.bf16.mxu1 %v3223_v0 }
  0x4b   : > { %2808 = vmatprep.subr.msk.bf16.mxu0 %vm342_vm0, %v3336_v10  ;;  %2810 = vmatprep.subr.msk.bf16.mxu1 %vm342_vm0, %v3338_v11  ;;  %vm3541_vm0 = vcmp.eq.s32.totalorder %v813_v61, 1  ;;  %vm3616_vm2 = vcmp.eq.s32.totalorder %v825_v14, 1  ;;  %vm3620_vm3 = vcmp.eq.s32.totalorder %v821_v15, 1 }
  0x50   : > { %2805 = vmatmul.mubr.msk.bf16.vlgmr.msra.gmra.mrb[24].mxu0 %vm338_vm1, %v3090_v22  ;;  %2807 = vmatmul.mubr.msk.bf16.vlgmr.msra.gmra.mrb[24].mxu1 %vm338_vm1, %v3090_v22 }
  0x51   : > { %1225 = vmatpush1.bf16.msra.mxu0 %v356_v18  ;;  %1268 = vmatpush1.bf16.msra.mxu1 %v362_v19  ;;  %v829_v18 = vrot.slane %v3462_v43, %v3459_v42  ;;  %v3560_v19 = vsel %vm1053_vm10, 1, %v3223_v0 }
  0x52   : > { %1256 = vmatprep.mubr.bf16.mxu0 %v3223_v0  ;;  %1299 = vmatprep.mubr.bf16.mxu1 %v3223_v0  ;;  %v1058_v12 = vrot.slane %v3560_v19, %v3435_v30  ;;  %v1074_v9 = vrot.slane %v3560_v19, %v3453_v39  ;;  %v1082_v10 = vrot.slane %v3560_v19, %v3457_v41 }
  0x53   : > { %v1078_v11 = vrot.slane %v3560_v19, %v3455_v40 }
  0x54   : > { %vm3762_vm10 = vcmp.eq.s32.totalorder %v1074_v9, 1 }
  0x58   : > { %2809 = vmatmul.mubr.msk.bf16.vlgmr.msra.gmra.mrb[28].mxu0 %vm338_vm1, %v3090_v22  ;;  %2811 = vmatmul.mubr.msk.bf16.vlgmr.msra.gmra.mrb[28].mxu1 %vm338_vm1, %v3090_v22  ;;  %vm3612_vm1 = vcmp.eq.s32.totalorder %v817_v13, 1  ;;  %v1066_v13 = vrot.slane %v3560_v19, %v3444_v35 }
  0xf3   : > { %v3426_v26 = vpop.f32.mrb[0].mxu0  ;;  %v3429_v27 = vpop.f32.mrb[0].mxu1 }
  0xf4   : > { %v3431_v28 = vpop.f32.mrb[1].mxu0  ;;  %v3433_v29 = vpop.f32.mrb[1].mxu1  ;;  %v581_v16 = vsel %vm3492_vm4, %v3426_v26, 0.0  ;;  %v583_v17 = vsel %vm3500_vm6, %v3429_v27, 0.0 }
  0xf5   : > { %v3437_v31 = vpop.f32.mrb[2].mxu0  ;;  %v3439_v32 = vpop.f32.mrb[2].mxu1  ;;  %v582_v20 = vsel %vm3496_vm5, %v3431_v28, 0.0  ;;  %v584_v22 = vsel %vm3508_vm7, %v3433_v29, 0.0 }
  0xf6   : > { %v3446_v36 = vpop.f32.mrb[3].mxu0  ;;  %v3448_v37 = vpop.f32.mrb[3].mxu1  ;;  %v589_v21 = vsel %vm3492_vm4, %v3437_v31, 0.0  ;;  %v591_v23 = vsel %vm3500_vm6, %v3439_v32, 0.0  ;;  %vm3624_vm4 = vcmp.eq.s32.totalorder %v829_v18, 1  ;;  %vm3696_vm6 = vcmp.eq.s32.totalorder %v1066_v13, 1 }
  0xf7   : > { %v590_v27 = vsel %vm3496_vm5, %v3446_v36, 0.0  ;;  %v592_v28 = vsel %vm3508_vm7, %v3448_v37, 0.0  ;;  %vm3692_vm5 = vcmp.eq.s32.totalorder %v1058_v12, 1 }
  0xfb   : > { %v3468_v48 = vpop.f32.mrb[4].mxu0  ;;  %v3472_v51 = vpop.f32.mrb[4].mxu1 }
  0xfc   : > { %v3475_v53 = vpop.f32.mrb[5].mxu0  ;;  %v3477_v54 = vpop.f32.mrb[5].mxu1  ;;  %v585_v14 = vsel %vm3512_vm8, %v3468_v48, 0.0  ;;  %v587_v15 = vsel %vm3516_vm9, %v3472_v51, 0.0 }
  0xfd   : > { %v3486_v59 = vpop.f32.mrb[6].mxu0  ;;  %v3488_v60 = vpop.f32.mrb[6].mxu1  ;;  %v586_v18 = vsel %vm3521_vm11, %v3475_v53, 0.0  ;;  %v588_v48 = vsel %vm3525_vm12, %v3477_v54, 0.0 }
  0xfe   : > { %v3504_v2 = vpop.f32.mrb[7].mxu0  ;;  %v3506_v3 = vpop.f32.mrb[7].mxu1  ;;  %v595_v51 = vsel %vm3516_vm9, %v3488_v60, 0.0  ;;  %vm1310_vm9 = vcmp.eq.s32.totalorder %v3424_v24, 3 }
  0xff   : > { %v596_v53 = vsel %vm3525_vm12, %v3506_v3, 0.0  ;;  %vm3770_vm12 = vcmp.eq.s32.totalorder %v1078_v11, 1 }
 0x103   : > { %v658_v25 = vpop.f32.mrb[8].mxu0  ;;  %v701_v26 = vpop.f32.mrb[8].mxu1 }
 0x104   : > { %v838_v31 = vsel %vm3529_vm13, %v658_v25, 0.0  ;;  %v840_v29 = vsel %vm3533_vm14, %v701_v26, 0.0  ;;  %v660_v33 = vpop.f32.mrb[9].mxu0  ;;  %v703_v43 = vpop.f32.mrb[9].mxu1 }
 0x105   : > { %v3584_v44 = vadd.f32 %v838_v31, %v581_v16  ;;  %v3586_v32 = vadd.f32 %v840_v29, %v583_v17  ;;  %v839_v45 = vsel %vm3537_vm15, %v660_v33, 0.0  ;;  %v841_v36 = vsel %vm3541_vm0, %v703_v43, 0.0  ;;  %v662_v46 = vpop.f32.mrb[10].mxu0  ;;  %v705_v37 = vpop.f32.mrb[10].mxu1 }
 0x106   : > { %v3592_v47 = vadd.f32 %v839_v45, %v582_v20  ;;  %v3594_v49 = vadd.f32 %v841_v36, %v584_v22  ;;  %v846_v50 = vsel %vm3529_vm13, %v662_v46, 0.0  ;;  %v848_v52 = vsel %vm3533_vm14, %v705_v37, 0.0  ;;  %v664_v55 = vpop.f32.mrb[11].mxu0  ;;  %v707_v56 = vpop.f32.mrb[11].mxu1 }
 0x107   : > { %v3600_v57 = vadd.f32 %v846_v50, %v589_v21  ;;  %v3602_v58 = vadd.f32 %v848_v52, %v591_v23  ;;  %v847_v61 = vsel %vm3537_vm15, %v664_v55, 0.0  ;;  %v849_v62 = vsel %vm3541_vm0, %v707_v56, 0.0 }
 0x108   : > { %v3608_v63 = vadd.f32 %v847_v61, %v590_v27  ;;  %v3610_v1 = vadd.f32 %v849_v62, %v592_v28  ;;  %v1062_v16 = vrot.slane %v3560_v19, %v3442_v34  ;;  %v1070_v17 = vrot.slane %v3560_v19, %v3451_v38 }
 0x109   : > { %v593_v20 = vsel %vm3512_vm8, %v3486_v59, 0.0  ;;  %v594_v23 = vsel %vm3521_vm11, %v3504_v2, 0.0  ;;  %vm3766_vm11 = vcmp.eq.s32.totalorder %v1082_v10, 1 }
 0x10a   : > { %vm3700_vm7 = vcmp.eq.s32.totalorder %v1062_v16, 1  ;;  %vm3704_vm8 = vcmp.eq.s32.totalorder %v1070_v17, 1  ;;  %v1086_v16 = vrot.slane %v3560_v19, %v3459_v42 }
 0x10b   : > { %v744_v21 = vpop.f32.mrb[12].mxu0  ;;  %v787_v22 = vpop.f32.mrb[12].mxu1 }
 0x10c   : > { %v842_v59 = vsel %vm3612_vm1, %v744_v21, 0.0  ;;  %v844_v54 = vsel %vm3616_vm2, %v787_v22, 0.0  ;;  %v746_v5 = vpop.f32.mrb[13].mxu0  ;;  %v789_v25 = vpop.f32.mrb[13].mxu1  ;;  %vm3774_vm13 = vcmp.eq.s32.totalorder %v1086_v16, 1 }
 0x10d   : > { %v3664_v6 = vadd.f32 %v842_v59, %v585_v14  ;;  %v3666_v60 = vadd.f32 %v844_v54, %v587_v15  ;;  %v843_v7 = vsel %vm3620_vm3, %v746_v5, 0.0  ;;  %v845_v2 = vsel %vm3624_vm4, %v789_v25, 0.0  ;;  %v748_v8 = vpop.f32.mrb[14].mxu0  ;;  %v791_v3 = vpop.f32.mrb[14].mxu1 }
 0x10e   : > { %v3672_v26 = vadd.f32 %v843_v7, %v586_v18  ;;  %v3674_v27 = vadd.f32 %v845_v2, %v588_v48  ;;  %v850_v28 = vsel %vm3612_vm1, %v748_v8, 0.0  ;;  %v852_v31 = vsel %vm3616_vm2, %v791_v3, 0.0  ;;  %v750_v29 = vpop.f32.mrb[15].mxu0  ;;  %v793_v33 = vpop.f32.mrb[15].mxu1 }
 0x10f   : > { %v3680_v43 = vadd.f32 %v850_v28, %v593_v20  ;;  %v3682_v45 = vadd.f32 %v852_v31, %v595_v51  ;;  %v851_v36 = vsel %vm3620_vm3, %v750_v29, 0.0  ;;  %v853_v46 = vsel %vm3624_vm4, %v793_v33, 0.0 }
 0x110   : > { %v3688_v37 = vadd.f32 %v851_v36, %v594_v23  ;;  %v3690_v50 = vadd.f32 %v853_v46, %v596_v53 }
 0x113   : > { %v915_v62 = vpop.f32.mrb[16].mxu0  ;;  %v958_v4 = vpop.f32.mrb[16].mxu1 }
 0x114   : > { %v1095_v12 = vsel %vm3692_vm5, %v915_v62, 0.0  ;;  %v1097_v13 = vsel %vm3696_vm6, %v958_v4, 0.0  ;;  %v917_v14 = vpop.f32.mrb[17].mxu0  ;;  %v960_v15 = vpop.f32.mrb[17].mxu1 }
 0x115   : > { %v3722_v17 = vadd.f32 %v1095_v12, %v3584_v44  ;;  %v3725_v18 = vadd.f32 %v1097_v13, %v3586_v32  ;;  %v1096_v20 = vsel %vm3700_vm7, %v917_v14, 0.0  ;;  %v1098_v48 = vsel %vm3704_vm8, %v960_v15, 0.0  ;;  %v919_v51 = vpop.f32.mrb[18].mxu0  ;;  %v962_v21 = vpop.f32.mrb[18].mxu1 }
 0x116   : > { %v3732_v22 = vadd.f32 %v1096_v20, %v3592_v47  ;;  %v3735_v19 = vadd.f32 %v1098_v48, %v3594_v49  ;;  %v1103_v44 = vsel %vm3692_vm5, %v919_v51, 0.0  ;;  %v1105_v32 = vsel %vm3696_vm6, %v962_v21, 0.0  ;;  %v921_v23 = vpop.f32.mrb[19].mxu0  ;;  %v964_v53 = vpop.f32.mrb[19].mxu1 }
 0x117   : > { %v3742_v59 = vadd.f32 %v1103_v44, %v3600_v57  ;;  %v3745_v54 = vadd.f32 %v1105_v32, %v3602_v58  ;;  %v1104_v47 = vsel %vm3700_vm7, %v921_v23, 0.0  ;;  %v1106_v49 = vsel %vm3704_vm8, %v964_v53, 0.0 }
 0x118   : > { %v3752_v5 = vadd.f32 %v1104_v47, %v3608_v63  ;;  %v3755_v25 = vadd.f32 %v1106_v49, %v3610_v1  ;;  %v3760_v57 = vsel %vm1310_vm9, 1, %v3223_v0  ;;  %vm1466_vm6 = vcmask 130048  }
 0x119   : > { %v1315_v0 = vrot.slane %v3760_v57, %v3435_v30  ;;  %v1323_v8 = vrot.slane %v3760_v57, %v3444_v35  ;;  %v1319_v33 = vrot.slane %v3760_v57, %v3442_v34  ;;  %v1327_v36 = vrot.slane %v3760_v57, %v3451_v38 }
 0x11a   : > { %v1331_v15 = vrot.slane %v3760_v57, %v3453_v39  ;;  %v1339_v16 = vrot.slane %v3760_v57, %v3457_v41  ;;  %v1335_v44 = vrot.slane %v3760_v57, %v3455_v40  ;;  %v1343_v32 = vrot.slane %v3760_v57, %v3459_v42 }
 0x11b   : > { %v1001_v1 = vpop.f32.mrb[20].mxu0  ;;  %v1044_v24 = vpop.f32.mrb[20].mxu1  ;;  %vm3826_vm14 = vcmp.eq.s32.totalorder %v1315_v0, 1  ;;  %vm3830_vm15 = vcmp.eq.s32.totalorder %v1323_v8, 1  ;;  %vm3836_vm0 = vcmp.eq.s32.totalorder %v1319_v33, 1  ;;  %vm3840_vm1 = vcmp.eq.s32.totalorder %v1327_v36, 1 }
 0x11c   : > { %v1099_v3 = vsel %vm3762_vm10, %v1001_v1, 0.0  ;;  %v1101_v28 = vsel %vm3766_vm11, %v1044_v24, 0.0  ;;  %v1003_v31 = vpop.f32.mrb[21].mxu0  ;;  %v1046_v29 = vpop.f32.mrb[21].mxu1  ;;  %vm3884_vm2 = vcmp.eq.s32.totalorder %v1331_v15, 1  ;;  %vm3888_vm3 = vcmp.eq.s32.totalorder %v1339_v16, 1 }
 0x11d   : > { %v3791_v46 = vadd.f32 %v1099_v3, %v3664_v6  ;;  %v3794_v30 = vadd.f32 %v1101_v28, %v3666_v60  ;;  %v1100_v35 = vsel %vm3770_vm12, %v1003_v31, 0.0  ;;  %v1102_v52 = vsel %vm3774_vm13, %v1046_v29, 0.0  ;;  %v1005_v55 = vpop.f32.mrb[22].mxu0  ;;  %v1048_v56 = vpop.f32.mrb[22].mxu1 }
 0x11e   : > { %v3801_v61 = vadd.f32 %v1100_v35, %v3672_v26  ;;  %v3804_v34 = vadd.f32 %v1102_v52, %v3674_v27  ;;  %v1107_v38 = vsel %vm3762_vm10, %v1005_v55, 0.0  ;;  %v1109_v6 = vsel %vm3766_vm11, %v1048_v56, 0.0  ;;  %v1007_v60 = vpop.f32.mrb[23].mxu0  ;;  %v1050_v62 = vpop.f32.mrb[23].mxu1 }
 0x11f   : > { %v3811_v4 = vadd.f32 %v1107_v38, %v3680_v43  ;;  %v3814_v9 = vadd.f32 %v1109_v6, %v3682_v45  ;;  %v1108_v26 = vsel %vm3770_vm12, %v1007_v60, 0.0  ;;  %v1110_v27 = vsel %vm3774_vm13, %v1050_v62, 0.0  ;;  %v3834_v45 = vpop.permute.xlu0 %1388 }
 0x120   : > { %v3821_v10 = vadd.f32 %v1108_v26, %v3688_v37  ;;  %v3824_v11 = vadd.f32 %v1110_v27, %v3690_v50  ;;  %vm3894_vm4 = vcmp.eq.s32.totalorder %v1335_v44, 1  ;;  %vm3898_vm5 = vcmp.eq.s32.totalorder %v1343_v32, 1 }
 0x123   : > { %v1172_v50 = vpop.f32.mrb[24].mxu0  ;;  %v1215_v14 = vpop.f32.mrb[24].mxu1 }
 0x124   : > { %v1352_v20 = vsel %vm3826_vm14, %v1172_v50, 0.0  ;;  %v1354_v48 = vsel %vm3830_vm15, %v1215_v14, 0.0  ;;  %v1174_v51 = vpop.f32.mrb[25].mxu0  ;;  %v1217_v21 = vpop.f32.mrb[25].mxu1 }
 0x125   : > { %v1368_v23 = vadd.f32 %v1352_v20, %v3722_v17  ;;  %v1370_v39 = vadd.f32 %v1354_v48, %v3725_v18  ;;  %v1353_v41 = vsel %vm3836_vm0, %v1174_v51, 0.0  ;;  %v1355_v53 = vsel %vm3840_vm1, %v1217_v21, 0.0  ;;  %v1176_v47 = vpop.f32.mrb[26].mxu0  ;;  %v1219_v49 = vpop.f32.mrb[26].mxu1 }
 0x126   : > { %v1369_v58 = vadd.f32 %v1353_v41, %v3732_v22  ;;  %v1371_v7 = vadd.f32 %v1355_v53, %v3735_v19  ;;  %v1360_v40 = vsel %vm3826_vm14, %v1176_v47, 0.0  ;;  %v1362_v42 = vsel %vm3830_vm15, %v1219_v49, 0.0  ;;  %v1178_v17 = vpop.f32.mrb[27].mxu0  ;;  %v1221_v18 = vpop.f32.mrb[27].mxu1 }
 0x127   : > { %v3869_v57 = vadd.f32 %v3834_v45, %v1368_v23  ;;  %v1376_v2 = vadd.f32 %v1360_v40, %v3742_v59  ;;  %v1378_v63 = vadd.f32 %v1362_v42, %v3745_v54  ;;  %v1361_v22 = vsel %vm3836_vm0, %v1178_v17, 0.0  ;;  %v3882_v8 = vpop.permute.xlu0 %1393 }
 0x128   : > { %v3876_v19 = vadd.f32 %v3834_v45, %v1369_v58  ;;  %v1377_v1 = vadd.f32 %v1361_v22, %v3752_v5  ;;  %v1363_v24 = vsel %vm3840_vm1, %v1221_v18, 0.0  ;;  %v3910_v33 = vadd.f32 %v3834_v45, %v1371_v7 }
 0x129   : > { %v1379_v0 = vadd.f32 %v1363_v24, %v3755_v25  ;;  %v3903_v25 = vadd.f32 %v3834_v45, %v1370_v39  ;;  %v1430_v31 = vmul.f32 %v3869_v57, %v3869_v57  ;;  %v3918_v60 = vadd.f32 %v3882_v8, %v1376_v2 }
 0x12a   : > { %v1412_v54 = vadd.f32 %v3876_v19, %v3869_v57  ;;  %v1431_v29 = vmul.f32 %v3876_v19, %v3876_v19  ;;  %v3942_v21 = vadd.f32 %v3882_v8, %v1377_v1  ;;  %v3957_v47 = vadd.f32 %v3882_v8, %v1378_v63 }
 0x12b   : > { %v1258_v36 = vpop.f32.mrb[28].mxu0  ;;  %v1301_v35 = vpop.f32.mrb[28].mxu1  ;;  %v1432_v23 = vmul.f32 %v3903_v25, %v3903_v25  ;;  %v3975_v18 = vadd.f32 %v3882_v8, %v1379_v0 }
 0x12c   : > { %v1356_v52 = vsel %vm3884_vm2, %v1258_v36, 0.0  ;;  %v1358_v55 = vsel %vm3888_vm3, %v1301_v35, 0.0  ;;  %v1260_v56 = vpop.f32.mrb[29].mxu0  ;;  %v1303_v38 = vpop.f32.mrb[29].mxu1  ;;  %v1413_v6 = vadd.f32 %v1412_v54, %v3903_v25  ;;  %v1446_v16 = vadd.f32 %v1431_v29, %v1430_v31 }
 0x12d   : > { %v1372_v62 = vadd.f32 %v1356_v52, %v3791_v46  ;;  %v1374_v26 = vadd.f32 %v1358_v55, %v3794_v30  ;;  %v1357_v27 = vsel %vm3894_vm4, %v1260_v56, 0.0  ;;  %v1359_v12 = vsel %vm3898_vm5, %v1303_v38, 0.0  ;;  %v1262_v43 = vpop.f32.mrb[30].mxu0  ;;  %v1305_v13 = vpop.f32.mrb[30].mxu1 }
 0x12e   : > { %v1373_v37 = vadd.f32 %v1357_v27, %v3801_v61  ;;  %v1375_v50 = vadd.f32 %v1359_v12, %v3804_v34  ;;  %v1364_v14 = vsel %vm3884_vm2, %v1262_v43, 0.0  ;;  %v1366_v46 = vsel %vm3888_vm3, %v1305_v13, 0.0  ;;  %v1264_v15 = vpop.f32.mrb[31].mxu0  ;;  %v1307_v30 = vpop.f32.mrb[31].mxu1 }
 0x12f   : > { %v3933_v20 = vadd.f32 %v3834_v45, %v1372_v62  ;;  %v1380_v48 = vadd.f32 %v1364_v14, %v3811_v4  ;;  %v1382_v51 = vadd.f32 %v1366_v46, %v3814_v9  ;;  %v1365_v61 = vsel %vm3894_vm4, %v1264_v15, 0.0 }
 0x130   : > { %v1367_v34 = vsel %vm3898_vm5, %v1307_v30, 0.0  ;;  %v3945_v44 = vadd.f32 %v3834_v45, %v1373_v37  ;;  %v1381_v32 = vadd.f32 %v1365_v61, %v3821_v10  ;;  %v1433_v4 = vmul.f32 %v3910_v33, %v3910_v33 }
 0x131   : > { %v1383_v9 = vadd.f32 %v1367_v34, %v3824_v11  ;;  %v1414_v39 = vadd.f32 %v1413_v6, %v3910_v33  ;;  %v1434_v41 = vmul.f32 %v3933_v20, %v3933_v20  ;;  %v1447_v53 = vadd.f32 %v1446_v16, %v1432_v23 }
 0x132   : > { %v1438_v10 = vmul.f32 %v3918_v60, %v3918_v60  ;;  %v3962_v49 = vadd.f32 %v3834_v45, %v1374_v26  ;;  %v1421_v11 = vadd.f32 %v3942_v21, %v3918_v60  ;;  %v1439_v7 = vmul.f32 %v3942_v21, %v3942_v21 }
 0x133   : > { %v1415_v58 = vadd.f32 %v1414_v39, %v3933_v20  ;;  %v3970_v40 = vadd.f32 %v3882_v8, %v1380_v48  ;;  %v1435_v42 = vmul.f32 %v3945_v44, %v3945_v44  ;;  %v1448_v17 = vadd.f32 %v1447_v53, %v1433_v4 }
 0x134   : > { %v3978_v2 = vadd.f32 %v3834_v45, %v1375_v50  ;;  %v1422_v22 = vadd.f32 %v1421_v11, %v3957_v47  ;;  %v3983_v1 = vadd.f32 %v3882_v8, %v1381_v32  ;;  %v1440_v3 = vmul.f32 %v3957_v47, %v3957_v47  ;;  %v1465_v32 = vld [vmem:[%s4227_s4 + $0x8] sm:$0xff] }
 0x135   : > { %v1416_v63 = vadd.f32 %v1415_v58, %v3945_v44  ;;  %v1449_v24 = vadd.f32 %v1448_v17, %v1434_v41  ;;  %v1455_v59 = vadd.f32 %v1439_v7, %v1438_v10  ;;  %v1436_v0 = vmul.f32 %v3962_v49, %v3962_v49 }
 0x136   : > { %v1423_v45 = vadd.f32 %v1422_v22, %v3975_v18  ;;  %v1442_v5 = vmul.f32 %v3970_v40, %v3970_v40  ;;  %v1441_v31 = vmul.f32 %v3975_v18, %v3975_v18  ;;  %v3996_v36 = vadd.f32 %v3882_v8, %v1382_v51 }
 0x137   : > { %v1417_v54 = vadd.f32 %v1416_v63, %v3962_v49  ;;  %v1450_v28 = vadd.f32 %v1449_v24, %v1435_v42  ;;  %v1456_v29 = vadd.f32 %v1455_v59, %v1440_v3  ;;  %v1437_v55 = vmul.f32 %v3978_v2, %v3978_v2 }
 0x138   : > { %v1424_v52 = vadd.f32 %v1423_v45, %v3970_v40  ;;  %v1443_v38 = vmul.f32 %v3983_v1, %v3983_v1  ;;  %v4006_v12 = vadd.f32 %v3882_v8, %v1383_v9  ;;  %v1444_v13 = vmul.f32 %v3996_v36, %v3996_v36  ;;  %v1464_v8 = vld [vmem:[%s4227_s4] sm:$0xff] }
 0x139   : > { %v1418_v35 = vadd.f32 %v1417_v54, %v3978_v2  ;;  %v1451_v56 = vadd.f32 %v1450_v28, %v1436_v0  ;;  %v1457_v6 = vadd.f32 %v1456_v29, %v1441_v31  ;;  %v1468_v30 = vsel %vm1466_vm6, %v1464_v8, 0 }
 0x13a   : > { %v1425_v62 = vadd.f32 %v1424_v52, %v3983_v1  ;;  %v1445_v46 = vmul.f32 %v4006_v12, %v4006_v12  ;;  %v4017_v16 = vand.u32 4294901760, %v1468_v30  ;;  %v1471_v23 = vsel %vm1466_vm6, %v1465_v32, 0 }
 0x13b   : > { %1419 = vadd.xlane.f32.xlu1 %v1418_v35  ;;  %v1452_v26 = vadd.f32 %v1451_v56, %v1437_v55  ;;  %v1458_v27 = vadd.f32 %v1457_v6, %v1442_v5  ;;  %v4026_v4 = vand.u32 4294901760, %v1471_v23 }
 0x13c   : > { %v1426_v43 = vadd.f32 %v1425_v62, %v3996_v36  ;;  %v1541_v48 = vsub.f32 %v1468_v30, %v4017_v16 }
 0x13d   : > { %1453 = vadd.xlane.f32.xlu0 %v1452_v26  ;;  %v1459_v37 = vadd.f32 %v1458_v27, %v1443_v38  ;;  %v1551_v9 = vsub.f32 %v1471_v23, %v4026_v4 }
 0x13e   : > { %v1427_v50 = vadd.f32 %v1426_v43, %v4006_v12  ;;  %v4020_v51 = vand.u32 4294901760, %v1541_v48 }
 0x13f   : > { %v1460_v14 = vadd.f32 %v1459_v37, %v1444_v13  ;;  %v4029_v53 = vand.u32 4294901760, %v1551_v9 }
 0x140   : > { %1428 = vadd.xlane.f32.xlu1 %v1427_v50  ;;  %v1543_v61 = vsub.f32 %v1541_v48, %v4020_v51 }
 0x141   : > { %v1461_v15 = vadd.f32 %v1460_v14, %v1445_v46  ;;  %v1553_v42 = vsub.f32 %v1551_v9, %v4029_v53 }
 0x142   : > { %v1544_v34 = vand.u32 4294901760, %v1543_v61 }
 0x143   : > { %v1554_v54 = vand.u32 4294901760, %v1553_v42 }
 0x144   : > { %1462 = vadd.xlane.f32.xlu1 %v1461_v15  ;;  %2887 = vmatprep.mubr.f32.mxu0 %v1544_v34 }
 0x145   : > { %2929 = vmatprep.mubr.f32.mxu1 %v1544_v34 }
 0x1c8   : > { %v1420_v39 = vpop.xlane.xlu1 %1419 }
 0x1c9   : > { %v1474_v41 = vand.u32 4294901760, %v1420_v39 }
 0x1ca   : > { %v1454_v58 = vpop.xlane.xlu0 %1453 }
 0x1cb   : > { %v1562_v10 = vsub.f32 %v1420_v39, %v1474_v41  ;;  %v1976_v11 = vand.u32 4294901760, %v1454_v58 }
 0x1cd   : > { %v1429_v7 = vpop.xlane.xlu1 %1428  ;;  %v1563_v17 = vand.u32 4294901760, %v1562_v10  ;;  %v2064_v63 = vsub.f32 %v1454_v58, %v1976_v11 }
 0x1ce   : > { %v1477_v22 = vand.u32 4294901760, %v1429_v7 }
 0x1cf   : > { %v1564_v0 = vsub.f32 %v1562_v10, %v1563_v17  ;;  %v2065_v45 = vand.u32 4294901760, %v2064_v63 }
 0x1d0   : > { %v2967_v24 = vpack.c.bf16 %v1477_v22, %v1474_v41  ;;  %v1569_v3 = vsub.f32 %v1429_v7, %v1477_v22 }
 0x1d1   : > { %v1463_v59 = vpop.xlane.xlu1 %1462  ;;  %v2066_v52 = vsub.f32 %v2064_v63, %v2065_v45  ;;  %v1565_v56 = vand.u32 4294901760, %v1564_v0 }
 0x1d2   : > { %v1570_v5 = vand.u32 4294901760, %v1569_v3  ;;  %v1979_v28 = vand.u32 4294901760, %v1463_v59  ;;  %2968 = vmatprep.subr.bf16.mxu0 %v2967_v24  ;;  %v2975_v27 = vpack.c.bf16 %v1569_v3, %v1562_v10 }
 0x1d3   : > { %2970 = vmatpush3.bf16.msra.mxu0 %v2967_v24  ;;  %v2067_v26 = vand.u32 4294901760, %v2066_v52 }
 0x1d4   : > { %v1571_v31 = vsub.f32 %v1569_v3, %v1570_v5  ;;  %v2991_v29 = vpack.c.bf16 %v1979_v28, %v1976_v11  ;;  %v2071_v35 = vsub.f32 %v1463_v59, %v1979_v28  ;;  %v2983_v50 = vpack.c.bf16 %v1570_v5, %v1563_v17 }
 0x1d6   : > { %v2072_v55 = vand.u32 4294901760, %v2071_v35  ;;  %2888 = vmatmul.mubr.f32.vlgmr.msra.gmra.mrb[32].mxu0 %v1554_v54  ;;  %2992 = vmatprep.subr.bf16.mxu1 %v2991_v29  ;;  %v1572_v38 = vand.u32 4294901760, %v1571_v31  ;;  %v2999_v37 = vpack.c.bf16 %v2071_v35, %v2064_v63  ;;  %v2493_v63 = vld [vmem:[%s4230_s7] sm:$0xff] }
 0x1d7   : > { %2994 = vmatpush3.bf16.msra.mxu1 %v2991_v29  ;;  %2894 = vmatprep.mubr.f32.mxu0 %v4017_v16 }
 0x1d8   : > { %v2073_v6 = vsub.f32 %v2071_v35, %v2072_v55  ;;  %v2971_v62 = vpack.c.bf16 %v1572_v38, %v1565_v56  ;;  %v3007_v14 = vpack.c.bf16 %v2072_v55, %v2065_v45 }
 0x1da   : > { %2972 = vmatprep.subr.bf16.mxu0 %v2971_v62  ;;  %2930 = vmatmul.mubr.f32.vlgmr.msra.gmra.mrb[32].mxu1 %v1554_v54  ;;  %v2074_v43 = vand.u32 4294901760, %v2073_v6 }
 0x1db   : > { %2974 = vmatpush3.bf16.msra.mxu0 %v2971_v62  ;;  %2936 = vmatprep.mubr.f32.mxu1 %v4017_v16 }
 0x1dc   : > { %2976 = vmatprep.subr.bf16.mxu0 %v2975_v27  ;;  %v2995_v13 = vpack.c.bf16 %v2074_v43, %v2067_v26 }
 0x1de   : > { %2895 = vmatmul.mubr.f32.vlgmr.msra.gmra.mrb[32].mxu0 %v4026_v4  ;;  %2996 = vmatprep.subr.bf16.mxu1 %v2995_v13 }
 0x1df   : > { %2978 = vmatpush3.bf16.msra.mxu0 %v2975_v27  ;;  %2998 = vmatpush3.bf16.msra.mxu1 %v2995_v13 }
 0x1e0   : > { %2980 = vmatprep.subr.bf16.mxu0 %v2967_v24  ;;  %3000 = vmatprep.subr.bf16.mxu1 %v2999_v37 }
 0x1e1   : > { %2901 = vmatprep.mubr.f32.mxu0 %v1541_v48 }
 0x1e2   : > { %2937 = vmatmul.mubr.f32.vlgmr.msra.gmra.mrb[32].mxu1 %v4026_v4 }
 0x1e3   : > { %3002 = vmatpush3.bf16.msra.mxu1 %v2999_v37  ;;  %2943 = vmatprep.mubr.f32.mxu1 %v1541_v48 }
 0x1e4   : > { %3004 = vmatprep.subr.bf16.mxu1 %v2991_v29 }
 0x1e6   : > { %2902 = vmatmul.mubr.f32.vlgmr.msra.gmra.mrb[32].mxu0 %v1551_v9 }
 0x1e7   : > { %2982 = vmatpush3.bf16.msra.mxu0 %v2967_v24  ;;  %2908 = vmatprep.mubr.f32.mxu0 %v4020_v51 }
 0x1e8   : > { %2984 = vmatprep.subr.bf16.mxu0 %v2983_v50 }
 0x1ea   : > { %2944 = vmatmul.mubr.f32.vlgmr.msra.gmra.mrb[32].mxu1 %v1551_v9 }
 0x1eb   : > { %3006 = vmatpush3.bf16.msra.mxu1 %v2991_v29  ;;  %2950 = vmatprep.mubr.f32.mxu1 %v4020_v51 }
 0x1ec   : > { %3008 = vmatprep.subr.bf16.mxu1 %v3007_v14 }
 0x1ee   : > { %2909 = vmatmul.mubr.f32.vlgmr.msra.gmra.mrb[32].mxu0 %v4029_v53 }
 0x1ef   : > { %2986 = vmatpush3.bf16.msra.mxu0 %v2983_v50  ;;  %2915 = vmatprep.mubr.f32.mxu0 %v4017_v16 }
 0x1f0   : > { %2988 = vmatprep.subr.bf16.mxu0 %v2967_v24 }
 0x1f2   : > { %2951 = vmatmul.mubr.f32.vlgmr.msra.gmra.mrb[32].mxu1 %v4029_v53 }
 0x1f3   : > { %3010 = vmatpush3.bf16.msra.mxu1 %v3007_v14  ;;  %2957 = vmatprep.mubr.f32.mxu1 %v4017_v16 }
 0x1f4   : > { %3012 = vmatprep.subr.bf16.mxu1 %v2991_v29 }
 0x1f6   : > { %2916 = vmatmul.mubr.f32.vlgmr.msra.gmra.mrb[32].mxu0 %v4026_v4 }
 0x1f7   : > { %2990 = vmatpush3.bf16.msra.mxu0 %v2967_v24  ;;  %2922 = vmatprep.mubr.f32.mxu0 %v4017_v16  ;;  %v2494_v24 = vld [vmem:[%s4230_s7 + $0x8] sm:$0xff] }
 0x1fa   : > { %2958 = vmatmul.mubr.f32.vlgmr.msra.gmra.mrb[32].mxu1 %v4026_v4 }
 0x1fb   : > { %3014 = vmatpush3.bf16.msra.mxu1 %v2991_v29  ;;  %2964 = vmatprep.mubr.f32.mxu1 %v4017_v16  ;;  %v2490_v16 = vld [vmem:[%s4229_s6 + $0x8] sm:$0xff] }
 0x1fe   : > { %2923 = vmatmul.mubr.f32.vlgmr.msra.gmra.mrb[32].mxu0 %v4026_v4 }
 0x202   : > { %2965 = vmatmul.mubr.f32.vlgmr.msra.gmra.mrb[32].mxu1 %v4026_v4  ;;  %v2489_v4 = vld [vmem:[%s4229_s6] sm:$0xff] }
 0x2d1   : > { %v2924_v46 = vpop.f32.mrb[32].mxu0 }
 0x2d2   : > { %v2478_v15 = vmul.f32 0.00048828125, %v2924_v46  ;;  %v1965_v8 = vpop.f32.mrb[33].mxu0 }
 0x2d3   : > { %v2477_v30 = vmul.f32 0.00048828125, %v1965_v8 }
 0x2d4   : > { %v2482_v51 = vmul.f32 %v2478_v15, %v2478_v15 }
 0x2d5   : > { %v2966_v48 = vpop.f32.mrb[32].mxu1  ;;  %v2481_v32 = vmul.f32 %v2477_v30, %v2477_v30 }
 0x2d6   : > { %v2480_v61 = vmul.f32 0.00048828125, %v2966_v48  ;;  %v2467_v34 = vpop.f32.mrb[33].mxu1 }
 0x2d7   : > { %v2479_v23 = vmul.f32 0.00048828125, %v2467_v34 }
 0x2d8   : > { %v2484_v9 = vsub.f32 %v2480_v61, %v2482_v51 }
 0x2d9   : > { %v2483_v39 = vsub.f32 %v2479_v23, %v2481_v32 }
 0x2da   : > { %v2486_v41 = vadd.f32 1e-05, %v2484_v9 }
 0x2db   : > { %v2485_v53 = vadd.f32 1e-05, %v2483_v39 }
 0x2dc   : > { %3091 = vrsqrt.f32 %v2486_v41 }
 0x2dd   : > { %3093 = vrsqrt.f32 %v2485_v53 }
 0x2e6   : > { %v3092_v10 = vpop.eup %3091 }
 0x2e7   : > { %v3094_v58 = vpop.eup %3093  ;;  %v2492_v11 = vmul.f32 %v3092_v10, %v2490_v16 }
 0x2e8   : > { %v2491_v7 = vmul.f32 %v3094_v58, %v2489_v4 }
 0x2e9   : > { %2506 = vperm.xlu1 %3078, %v2492_v11   ;;  %v2496_v42 = vmul.f32 %v2492_v11, %v2478_v15 }
 0x2ea   : > { %v2495_v17 = vmul.f32 %v2491_v7, %v2477_v30 }
 0x2eb   : > { %v2498_v3 = vsub.f32 %v2494_v24, %v2496_v42 }
 0x2ec   : > { %v2497_v22 = vsub.f32 %v2493_v63, %v2495_v17 }
 0x2ed   : > { %2501 = vperm.xlu1 %3078, %v2491_v7  }
 0x2f1   : > { %2527 = vperm.xlu1 %3078, %v2497_v22  }
 0x2f5   : > { %2532 = vperm.xlu1 %3078, %v2498_v3  }
 0x368   : > { %v4060_v59 = vpop.permute.xlu1 %2506 }
 0x369   : > { %v2520_v14 = vmul.f32 %v4060_v59, %v3975_v18  ;;  %v2521_v15 = vmul.f32 %v4060_v59, %v3970_v40  ;;  %v2522_v39 = vmul.f32 %v4060_v59, %v3983_v1  ;;  %v2523_v16 = vmul.f32 %v4060_v59, %v3996_v36 }
 0x36a   : > { %v2524_v58 = vmul.f32 %v4060_v59, %v4006_v12 }
 0x36c   : > { %v2502_v54 = vpop.permute.xlu1 %2501 }
 0x36d   : > { %v2509_v0 = vmul.f32 %v2502_v54, %v3869_v57  ;;  %v2510_v45 = vmul.f32 %v2502_v54, %v3876_v19  ;;  %v2511_v5 = vmul.f32 %v2502_v54, %v3903_v25  ;;  %v2512_v28 = vmul.f32 %v2502_v54, %v3910_v33 }
 0x36e   : > { %v2513_v31 = vmul.f32 %v2502_v54, %v3933_v20  ;;  %v2514_v29 = vmul.f32 %v2502_v54, %v3945_v44  ;;  %v2515_v35 = vmul.f32 %v2502_v54, %v3962_v49  ;;  %v2516_v19 = vmul.f32 %v2502_v54, %v3978_v2 }
 0x36f   : > { %v2517_v20 = vmul.f32 %v4060_v59, %v3918_v60  ;;  %v2518_v2 = vmul.f32 %v4060_v59, %v3942_v21  ;;  %v2519_v60 = vmul.f32 %v4060_v59, %v3957_v47 }
 0x370   : > { %v2528_v52 = vpop.permute.xlu1 %2527 }
 0x371   : > { %v4069_v55 = vadd.f32 %v2528_v52, %v2509_v0  ;;  %v4071_v56 = vadd.f32 %v2528_v52, %v2510_v45  ;;  %v4073_v38 = vadd.f32 %v2528_v52, %v2511_v5  ;;  %v4075_v57 = vadd.f32 %v2528_v52, %v2512_v28 }
 0x372   : > { %v4078_v25 = vadd.f32 %v2528_v52, %v2513_v31  ;;  %v4080_v33 = vadd.f32 %v2528_v52, %v2514_v29  ;;  %v4084_v44 = vadd.f32 %v2528_v52, %v2515_v35  ;;  %v4089_v26 = vadd.f32 %v2528_v52, %v2516_v19 }
 0x373   : > { %v2812_v49 = vmul.f32 -1.442695, %v4069_v55  ;;  %v2813_v6 = vmul.f32 -1.442695, %v4071_v56  ;;  %v2814_v62 = vmul.f32 -1.442695, %v4073_v38 }
 0x374   : > { %v2815_v27 = vmul.f32 -1.442695, %v4075_v57  ;;  %v2533_v43 = vpop.permute.xlu1 %2532  ;;  %v2816_v13 = vmul.f32 -1.442695, %v4078_v25  ;;  %v2817_v50 = vmul.f32 -1.442695, %v4080_v33 }
 0x375   : > { %3095 = vpow2.f32 %v2812_v49  ;;  %v4097_v37 = vadd.f32 %v2533_v43, %v2517_v20  ;;  %v4102_v46 = vadd.f32 %v2533_v43, %v2518_v2  ;;  %v2818_v21 = vmul.f32 -1.442695, %v4084_v44 }
 0x376   : > { %3097 = vpow2.f32 %v2813_v6  ;;  %v4107_v8 = vadd.f32 %v2533_v43, %v2519_v60  ;;  %v2819_v47 = vmul.f32 -1.442695, %v4089_v26  ;;  %v4110_v30 = vadd.f32 %v2533_v43, %v2520_v14 }
 0x377   : > { %3099 = vpow2.f32 %v2814_v62  ;;  %v4112_v48 = vadd.f32 %v2533_v43, %v2521_v15  ;;  %v2820_v18 = vmul.f32 -1.442695, %v4097_v37  ;;  %v2821_v51 = vmul.f32 -1.442695, %v4102_v46 }
 0x378   : > { %3101 = vpow2.f32 %v2815_v27  ;;  %v2822_v61 = vmul.f32 -1.442695, %v4107_v8  ;;  %v2823_v40 = vmul.f32 -1.442695, %v4110_v30  ;;  %v4125_v11 = vadd.f32 %v2533_v43, %v2522_v39 }
 0x379   : > { %3103 = vpow2.f32 %v2816_v13  ;;  %v2824_v34 = vmul.f32 -1.442695, %v4112_v48  ;;  %v4127_v1 = vadd.f32 %v2533_v43, %v2523_v16  ;;  %v4129_v22 = vadd.f32 %v2533_v43, %v2524_v58 }
 0x37a   : > { %3105 = vpow2.f32 %v2817_v50  ;;  %v2825_v12 = vmul.f32 -1.442695, %v4125_v11 }
 0x37b   : > { %3107 = vpow2.f32 %v2818_v21  ;;  %v2826_v45 = vmul.f32 -1.442695, %v4127_v1  ;;  %v2827_v28 = vmul.f32 -1.442695, %v4129_v22 }
 0x37c   : > { %3109 = vpow2.f32 %v2819_v47 }
 0x37d   : > { %3111 = vpow2.f32 %v2820_v18 }
 0x37e   : > { %3113 = vpow2.f32 %v2821_v51 }
 0x37f   : > { %v3096_v32 = vpop.eup %3095  ;;  %3115 = vpow2.f32 %v2822_v61 }
 0x380   : > { %v3098_v23 = vpop.eup %3097  ;;  %v2599_v9 = vadd.f32 1.0, %v3096_v32  ;;  %3117 = vpow2.f32 %v2823_v40 }
 0x381   : > { %v3100_v41 = vpop.eup %3099  ;;  %v2600_v53 = vadd.f32 1.0, %v3098_v23  ;;  %3119 = vpow2.f32 %v2824_v34 }
 0x382   : > { %v3102_v4 = vpop.eup %3101  ;;  %v2601_v10 = vadd.f32 1.0, %v3100_v41  ;;  %3121 = vrcp.f32 %v2599_v9 }
 0x383   : > { %v3104_v7 = vpop.eup %3103  ;;  %v2602_v42 = vadd.f32 1.0, %v3102_v4  ;;  %3123 = vrcp.f32 %v2600_v53 }
 0x384   : > { %v3106_v17 = vpop.eup %3105  ;;  %v2603_v63 = vadd.f32 1.0, %v3104_v7  ;;  %3125 = vrcp.f32 %v2601_v10 }
 0x385   : > { %v3108_v36 = vpop.eup %3107  ;;  %v2604_v24 = vadd.f32 1.0, %v3106_v17  ;;  %3127 = vrcp.f32 %v2602_v42 }
 0x386   : > { %v3110_v3 = vpop.eup %3109  ;;  %v2605_v54 = vadd.f32 1.0, %v3108_v36  ;;  %3129 = vrcp.f32 %v2603_v63 }
 0x387   : > { %v3112_v59 = vpop.eup %3111  ;;  %v2606_v0 = vadd.f32 1.0, %v3110_v3  ;;  %3131 = vrcp.f32 %v2604_v24 }
 0x388   : > { %v3114_v5 = vpop.eup %3113  ;;  %3133 = vrcp.f32 %v2605_v54  ;;  %v2607_v29 = vadd.f32 1.0, %v3112_v59 }
 0x389   : > { %v3116_v31 = vpop.eup %3115  ;;  %3135 = vrcp.f32 %v2606_v0  ;;  %v2608_v52 = vadd.f32 1.0, %v3114_v5 }
 0x38a   : > { %v3118_v35 = vpop.eup %3117  ;;  %3137 = vpow2.f32 %v2825_v12  ;;  %v2609_v20 = vadd.f32 1.0, %v3116_v31 }
 0x38b   : > { %v3120_v19 = vpop.eup %3119  ;;  %3139 = vpow2.f32 %v2826_v45  ;;  %v2610_v6 = vadd.f32 1.0, %v3118_v35 }
 0x38c   : > { %v3122_v49 = vpop.eup %3121  ;;  %3141 = vpow2.f32 %v2827_v28  ;;  %v2611_v2 = vadd.f32 1.0, %v3120_v19 }
 0x38d   : > { %v3124_v62 = vpop.eup %3123  ;;  %v2647_v27 = vmul.f32 %v3122_v49, %v4069_v55  ;;  %3143 = vrcp.f32 %v2607_v29 }
 0x38e   : > { %v3126_v43 = vpop.eup %3125  ;;  %v2648_v13 = vmul.f32 %v3124_v62, %v4071_v56  ;;  %3145 = vrcp.f32 %v2608_v52 }
 0x38f   : > { %v3128_v60 = vpop.eup %3127  ;;  %v2649_v50 = vmul.f32 %v3126_v43, %v4073_v38  ;;  %2663 = vst [vmem:[%s4140_s21] sm:$0xff] %v2647_v27  ;;  %3147 = vrcp.f32 %v2609_v20 }
 0x390   : > { %v3130_v14 = vpop.eup %3129  ;;  %v2650_v55 = vmul.f32 %v3128_v60, %v4075_v57  ;;  %2664 = vst [vmem:[%s4140_s21 + $0x8] sm:$0xff] %v2648_v13  ;;  %3149 = vrcp.f32 %v2610_v6 }
 0x391   : > { %v3132_v56 = vpop.eup %3131  ;;  %v2651_v21 = vmul.f32 %v3130_v14, %v4078_v25  ;;  %2665 = vst [vmem:[%s4140_s21 + $0x10] sm:$0xff] %v2649_v50  ;;  %3151 = vrcp.f32 %v2611_v2 }
 0x392   : > { %v3134_v38 = vpop.eup %3133  ;;  %v2652_v15 = vmul.f32 %v3132_v56, %v4080_v33  ;;  %2666 = vst [vmem:[%s4140_s21 + $0x18] sm:$0xff] %v2650_v55 }
 0x393   : > { %v3136_v47 = vpop.eup %3135  ;;  %v2653_v18 = vmul.f32 %v3134_v38, %v4084_v44  ;;  %2667 = vst [vmem:[%s4140_s21 + $0x20] sm:$0xff] %v2651_v21 }
 0x394   : > { %v3138_v51 = vpop.eup %3137  ;;  %v2654_v57 = vmul.f32 %v3136_v47, %v4089_v26  ;;  %2668 = vst [vmem:[%s4140_s21 + $0x28] sm:$0xff] %v2652_v15 }
 0x395   : > { %v3140_v61 = vpop.eup %3139  ;;  %2669 = vst [vmem:[%s4140_s21 + $0x30] sm:$0xff] %v2653_v18  ;;  %v2612_v40 = vadd.f32 1.0, %v3138_v51 }
 0x396   : > { %v3142_v25 = vpop.eup %3141  ;;  %2670 = vst [vmem:[%s4140_s21 + $0x38] sm:$0xff] %v2654_v57  ;;  %v2613_v34 = vadd.f32 1.0, %v3140_v61 }
 0x397   : > { %v3144_v32 = vpop.eup %3143  ;;  %v2614_v33 = vadd.f32 1.0, %v3142_v25  ;;  %3153 = vrcp.f32 %v2612_v40 }
 0x398   : > { %v3146_v44 = vpop.eup %3145  ;;  %3155 = vrcp.f32 %v2613_v34  ;;  %v2655_v26 = vmul.f32 %v3144_v32, %v4097_v37 }
 0x399   : > { %v3148_v23 = vpop.eup %3147  ;;  %3157 = vrcp.f32 %v2614_v33  ;;  %v2656_v9 = vmul.f32 %v3146_v44, %v4102_v46 }
 0x39a   : > { %v3150_v39 = vpop.eup %3149  ;;  %v2657_v41 = vmul.f32 %v3148_v23, %v4107_v8  ;;  %2671 = vst [vmem:[%s4140_s21 + $0x40] sm:$0xff] %v2655_v26 }
 0x39b   : > { %v3152_v53 = vpop.eup %3151  ;;  %v2658_v16 = vmul.f32 %v3150_v39, %v4110_v30  ;;  %2672 = vst [vmem:[%s4140_s21 + $0x48] sm:$0xff] %v2656_v9 }
 0x39c   : > { %v2659_v4 = vmul.f32 %v3152_v53, %v4112_v48  ;;  %2673 = vst [vmem:[%s4140_s21 + $0x50] sm:$0xff] %v2657_v41 }
 0x39d   : > { %2674 = vst [vmem:[%s4140_s21 + $0x58] sm:$0xff] %v2658_v16 }
 0x39e   : > { %2675 = vst [vmem:[%s4140_s21 + $0x60] sm:$0xff] %v2659_v4 }
 0x3a1   : > { %v3154_v37 = vpop.eup %3153 }
 0x3a2   : > { %v3156_v46 = vpop.eup %3155  ;;  %v2660_v8 = vmul.f32 %v3154_v37, %v4125_v11 }
 0x3a3   : > { %v3158_v10 = vpop.eup %3157  ;;  %v2661_v30 = vmul.f32 %v3156_v46, %v4127_v1 }
 0x3a4   : > { %v2662_v48 = vmul.f32 %v3158_v10, %v4129_v22  ;;  %2676 = vst [vmem:[%s4140_s21 + $0x68] sm:$0xff] %v2660_v8 }
 0x3a5   : > { %2677 = vst [vmem:[%s4140_s21 + $0x70] sm:$0xff] %v2661_v30 }
 0x3a6   : > { %2678 = vst [vmem:[%s4140_s21 + $0x78] sm:$0xff] %v2662_v48 }
 0x3a7   : > { %3172 = shalt.err (!%p3169_p3)
}
 0x3a8   : > { %s3173_s17 = scalar_lea.hbm %s4172_s25, 2048  ;;  %s3177_s20 = scalar_lea.hbm %s4231_s8, 4096 }
 0x3a9   : > { %p3174_p4 = scmp.ne.s32.totalorder %s4172_s25, %s3173_s17  ;;  %p3178_p9 = scmp.lt.u32.totalorder %s4172_s25, %s4231_s8 }
 0x3aa   : > { %p3179_p10 = scmp.lt.u32.totalorder %s3177_s20, %s3173_s17  ;;  %p3181_p12 = scmp.lt.u32.totalorder %s3173_s17, %s4172_s25 }
 0x3ab   : > { %p3175_p7 = pnand %p3174_p4, %p3310_p5 }
 0x3ac   : > { %p3180_p11 = por %p3179_p10, %p3178_p9 }
 0x3ad   : > { %p3176_p8 = pneg %p3175_p7 }
 0x3ae   : > { %p3182_p13 = por %p3181_p12, %p3180_p11 }
 0x3b0   : > { %p3183_p0 = pnand %p3182_p13, %p3176_p8 }
 0x3b2   : > { %3186 = shalt.err (!%p3183_p0)
}
 0x3b3   : > { %s3225_s0 = smov 1024   ;;  %s3226_s24 = smov 64  }
 0x3b4   : > { %3035 = dma.vmem_to_hbm [thread:$0]  (%p3310_p5), %s4174_s23, 2048, %s4172_s25, %s4182_s30, %s3225_s0, %s3225_s0, %s3226_s24  }
 0x3b5 PF: > { %p3041_p1 = scmp.ge.s32.totalorder %s3221_s29, 2  ;;  %s2708_s9 = sand.u32 1, %s3209_s26  }
 0x3b6   : > { %s2709_s11 = scalar_lea.sflag [#allocation4], %s2708_s9 }
 0x3b7   : > { %p3038_p2 = pnand %p3041_p1, %p3314_p6 }
 0x3b9   : > { %3204 = dma.done.wait (!%p3038_p2), %s2709_s11, 2048  }
 0x3ba   : > { %3206 = vsyncadd (!%p3038_p2), %s2709_s11, 4294965248  ;;  %p19_p3 = scmp.ge.s32.totalorder %s3297_s10, 4   ;;  %s4298_s26 = smov %s3213_s27 }
 0x3bb   : > { %s4299_s27 = smov %s3217_s28  ;;  %s4300_s28 = smov %s3308_s13 }
 0x3bc   : > { %s4301_s29 = smov %s3297_s10  ;;  %21 = sbr.rel (!%p19_p3) target bundleno = 3 (0x3), region = 90 }
 0x3c3   :  { %2714 = vsyncpa [#allocation4], 1 }
 0x3c4   :  { %2716 = vsyncpa [#allocation4 + $0x1], 1 }

</bundles_post_ra>
